<compile_context>
chip_gen: v6e
topology: v6e:2x2x1
jax: 0.10.0
libtpu: 0.0.40
codegen_flags: <defaults>
</compile_context>

<pallas_src>
import functools

import jax
import jax.numpy as jnp
from jax.experimental import pallas as pl
from jax.experimental.pallas import tpu as pltpu


def _round_up(n, m):
    return ((n + m - 1) // m) * m


# -----------------------------------------------------------------------------
# Kernel
# -----------------------------------------------------------------------------
def _dgm_kernel(L, hidden,
                x_ref,
                w1_w, w1_b,
                u_all, b_all,
                ws_all, wh_all,
                out_w, out_b,
                o_ref):
    """One batch tile of the full DGM forward (W1 + L gated layers + head)."""
    H = hidden
    cdt = w1_w.dtype                       # MXU operand dtype (f32 or bf16)
    x = x_ref[...].astype(cdt)             # (TB, in)

    # S = sigmoid(W1 x + b1); accumulate f32, activation math f32.
    S = jax.nn.sigmoid(
        jnp.dot(x, w1_w[...], preferred_element_type=jnp.float32) + w1_b[...])

    # Hoisted + fused x-side projections for every layer/gate, with paired
    # biases pre-summed:  x_proj[:, 4lH+gH : ...] = x @ U_gate[l] + (u_b+w_b).
    x_proj = (jnp.dot(x, u_all[...], preferred_element_type=jnp.float32)
              + b_all[...])                # (TB, 4*L*H), f32

    # L is a small Python int -> static unroll (weights indexed statically).
    for l in range(L):
        base = 4 * l * H
        xz = x_proj[:, base:base + H]
        xg = x_proj[:, base + H:base + 2 * H]
        xr = x_proj[:, base + 2 * H:base + 3 * H]
        xh = x_proj[:, base + 3 * H:base + 4 * H]

        # Fused S-side projection for z/g/r gates: [Wz[l] | Wg(shared) | Wr[l]].
        s3 = jnp.dot(S.astype(cdt), ws_all[l],
                     preferred_element_type=jnp.float32)   # (TB, 3H)
        Z = jax.nn.sigmoid(xz + s3[:, 0:H])
        G = jax.nn.sigmoid(xg + s3[:, H:2 * H])
        R = jax.nn.sigmoid(xr + s3[:, 2 * H:3 * H])
        Hc = jax.nn.sigmoid(
            xh + jnp.dot((S * R).astype(cdt), wh_all[l],
                         preferred_element_type=jnp.float32))
        S = (1.0 - G) * Hc + Z * S

    # Lane-dense head: out_w/out_b are zero-padded to a 128-lane multiple; the
    # wrapper slices back to the true output_size.
    out = (jnp.dot(S.astype(cdt), out_w[...], preferred_element_type=jnp.float32)
           + out_b[...])
    o_ref[...] = out.astype(o_ref.dtype)


# -----------------------------------------------------------------------------
# Wrapper
# -----------------------------------------------------------------------------
def dgm_forward(x, params, L, output_size, *, tile_b=256):
    """x: (B, input_size) float32. params: packed dict from pack_params()."""
    B, in_size = x.shape
    hidden = params["w1_w"].shape[-1]
    out_pad = params["out_w"].shape[-1]

    # Batch tile: multiple of 8, no larger than (rounded-up) batch.
    tile_b = _round_up(min(tile_b, B), 8)
    Bp = _round_up(B, tile_b)
    if Bp != B:
        x = jnp.pad(x, ((0, Bp - B), (0, 0)))

    kernel = functools.partial(_dgm_kernel, L, hidden)

    weight_args = (params["w1_w"], params["w1_b"],
                   params["u_all"], params["b_all"],
                   params["ws_all"], params["wh_all"],
                   params["out_w"], params["out_b"])

    def _resident(p):
        # Full-array block, same block index at every grid step -> weights stay
        # in VMEM (DMA'd once), no re-fetch per batch tile.
        nd = p.ndim
        return pl.BlockSpec(p.shape, lambda i, _nd=nd: (0,) * _nd)

    out_padded = pl.pallas_call(
        kernel,
        out_shape=jax.ShapeDtypeStruct((Bp, out_pad), jnp.float32),
        grid=(Bp // tile_b,),
        in_specs=[pl.BlockSpec((tile_b, in_size), lambda i: (i, 0))]
                 + [_resident(p) for p in weight_args],
        out_specs=pl.BlockSpec((tile_b, out_pad), lambda i: (i, 0)),
        compiler_params=pltpu.CompilerParams(
            dimension_semantics=("parallel",)),
    )(x, *weight_args)

    return out_padded[:B, :output_size]


# -----------------------------------------------------------------------------
# Parameter init (PyTorch nn.Linear semantics) + packing for the kernel
# -----------------------------------------------------------------------------
def _linear_init(key, fan_in, fan_out):
    """PyTorch nn.Linear default init: U(-1/sqrt(fan_in), 1/sqrt(fan_in)).
    Weight stored as (fan_in, fan_out); bias as (1, fan_out)."""
    kw, kb = jax.random.split(key)
    bound = 1.0 / jnp.sqrt(jnp.float32(fan_in))
    w = jax.random.uniform(kw, (fan_in, fan_out), jnp.float32, -bound, bound)
    b = jax.random.uniform(kb, (1, fan_out), jnp.float32, -bound, bound)
    return w, b


def init_raw_params(key, input_size, hidden_size, output_size, L):
    """Per-layer PyTorch-style parameters (used by the pure-JAX reference)."""
    keys = iter(jax.random.split(key, 8 * L + 3))

    def stack_linears(n, fan_in, fan_out):
        ws, bs = [], []
        for _ in range(n):
            w, b = _linear_init(next(keys), fan_in, fan_out)
            ws.append(w)
            bs.append(b)
        return jnp.stack(ws), jnp.stack(bs)  # (L, in, out), (L, 1, out)

    p = {}
    p["w1_w"], p["w1_b"] = _linear_init(next(keys), input_size, hidden_size)
    p["uz_w"], p["uz_b"] = stack_linears(L, input_size, hidden_size)
    p["wz_w"], p["wz_b"] = stack_linears(L, hidden_size, hidden_size)
    p["ug_w"], p["ug_b"] = stack_linears(L, input_size, hidden_size)
    p["wg_w"], p["wg_b"] = _linear_init(next(keys), hidden_size, hidden_size)  # shared
    p["ur_w"], p["ur_b"] = stack_linears(L, input_size, hidden_size)
    p["wr_w"], p["wr_b"] = stack_linears(L, hidden_size, hidden_size)
    p["uh_w"], p["uh_b"] = stack_linears(L, input_size, hidden_size)
    p["wh_w"], p["wh_b"] = stack_linears(L, hidden_size, hidden_size)
    p["out_w"], p["out_b"] = _linear_init(next(keys), hidden_size, output_size)
    return p


def pack_params(raw, L, hidden_size, output_size, compute_dtype=jnp.float32):
    """Repack raw per-layer weights into the fused layout the kernel expects.

    compute_dtype: dtype of MXU operands (use jnp.bfloat16 on v6e/v7x for full
    MXU rate / half the weight DMA bytes; accumulation stays f32 either way).
    Biases stay f32 (added post-accumulation).
    """
    H = hidden_size
    u_cols, b_cols, ws_list, wh_list = [], [], [], []
    for l in range(L):
        # x-side weights, per layer per gate, order [z, g, r, h].
        u_cols += [raw["uz_w"][l], raw["ug_w"][l], raw["ur_w"][l], raw["uh_w"][l]]
        # Pre-summed paired biases (u*_b[l] + w*_b[l]); Wg/Wg_b are shared.
        b_cols += [raw["uz_b"][l] + raw["wz_b"][l],
                   raw["ug_b"][l] + raw["wg_b"],
                   raw["ur_b"][l] + raw["wr_b"][l],
                   raw["uh_b"][l] + raw["wh_b"][l]]
        # Fused S-side weights for gates z/g/r (Wg replicated per layer).
        ws_list.append(jnp.concatenate(
            [raw["wz_w"][l], raw["wg_w"], raw["wr_w"][l]], axis=-1))
        wh_list.append(raw["wh_w"][l])

    u_all = jnp.concatenate(u_cols, axis=-1)      # (in, 4*L*H)
    b_all = jnp.concatenate(b_cols, axis=-1)      # (1,  4*L*H)
    ws_all = jnp.stack(ws_list)                   # (L, H, 3H)
    wh_all = jnp.stack(wh_list)                   # (L, H, H)

    # Zero-pad the output head to a 128-lane multiple -> unmasked stores.
    out_pad = _round_up(max(output_size, 128), 128)
    out_w = jnp.zeros((H, out_pad), jnp.float32).at[:, :output_size].set(raw["out_w"])
    out_b = jnp.zeros((1, out_pad), jnp.float32).at[:, :output_size].set(raw["out_b"])

    cd = compute_dtype
    return {
        "w1_w": raw["w1_w"].astype(cd),
        "w1_b": raw["w1_b"].astype(jnp.float32),
        "u_all": u_all.astype(cd),
        "b_all": b_all.astype(jnp.float32),
        "ws_all": ws_all.astype(cd),
        "wh_all": wh_all.astype(cd),
        "out_w": out_w.astype(cd),
        "out_b": out_b.astype(jnp.float32),
    }


# -----------------------------------------------------------------------------
# Pure-JAX reference (mirrors the PyTorch forward exactly, f32 throughout)
# -----------------------------------------------------------------------------
def dgm_reference(x, p, L):
    sig = jax.nn.sigmoid
    S = sig(x @ p["w1_w"] + p["w1_b"])
    for l in range(L):
        Z = sig(x @ p["uz_w"][l] + p["uz_b"][l] + S @ p["wz_w"][l] + p["wz_b"][l])
        G = sig(x @ p["ug_w"][l] + p["ug_b"][l] + S @ p["wg_w"] + p["wg_b"])
        R = sig(x @ p["ur_w"][l] + p["ur_b"][l] + S @ p["wr_w"][l] + p["wr_b"][l])
        H = sig(x @ p["uh_w"][l] + p["uh_b"][l] + (S * R) @ p["wh_w"][l] + p["wh_b"][l])
        S = (1.0 - G) * H + Z * S
    return S @ p["out_w"] + p["out_b"]


# TODO(synk): the module-level helpers density/F/F_m/G (trapezoid integrals) are
# not used by CustomNeuralNetwork.forward, so they are not part of the kernel.

if __name__ == "__main__":
    # Small shapes consistent with the DGM module: x = (space, time) -> input_size=2.
    batch, input_size, hidden_size, output_size, L = 16, 2, 32, 1, 3

    key = jax.random.PRNGKey(0)
    kx, kp = jax.random.split(key)
    x = jax.random.normal(kx, (batch, input_size), jnp.float32)
    raw = init_raw_params(kp, input_size, hidden_size, output_size, L)
    ref = dgm_reference(x, raw, L)

    # f32 MXU operands: exact match against the reference (tile_b=8 -> grid=2).
    packed_f32 = pack_params(raw, L, hidden_size, output_size,
                             compute_dtype=jnp.float32)
    out = jax.block_until_ready(
        dgm_forward(x, packed_f32, L, output_size, tile_b=8))
    assert out.shape == (batch, output_size)
    assert jnp.allclose(out, ref, atol=1e-5, rtol=1e-5), "f32 mismatch vs reference"

    # bf16 MXU operands / f32 accumulate (v6e/v7x fast path): loose tolerance.
    packed_bf16 = pack_params(raw, L, hidden_size, output_size,
                              compute_dtype=jnp.bfloat16)
    out_bf16 = jax.block_until_ready(
        dgm_forward(x, packed_bf16, L, output_size, tile_b=8))
    assert out_bf16.shape == (batch, output_size)
    assert jnp.allclose(out_bf16, ref, atol=1e-1, rtol=1e-1), "bf16 path diverged"

    print("KERNEL_OK")
</pallas_src>

<mosaic_0001>
module attributes {stable_mosaic.version = 11 : i64} {
  func.func @_dgm_kernel(%arg0: i32, %arg1: memref<8x2xf32, #tpu.memory_space<vmem>>, %arg2: memref<2x32xf32, #tpu.memory_space<vmem>>, %arg3: memref<1x32xf32, #tpu.memory_space<vmem>>, %arg4: memref<2x384xf32, #tpu.memory_space<vmem>>, %arg5: memref<1x384xf32, #tpu.memory_space<vmem>>, %arg6: memref<3x32x96xf32, #tpu.memory_space<vmem>>, %arg7: memref<3x32x32xf32, #tpu.memory_space<vmem>>, %arg8: memref<32x128xf32, #tpu.memory_space<vmem>>, %arg9: memref<1x128xf32, #tpu.memory_space<vmem>>, %arg10: memref<8x128xf32, #tpu.memory_space<vmem>>) attributes {dimension_semantics = [#tpu.dimension_semantics<parallel>], iteration_bounds = array<i64: 2>, scalar_prefetch = 0 : i64, scratch_operands = 0 : i64, tpu.core_type = #tpu.core_type<tc>, window_params = [{transform_indices = @transform_0, window_bounds = array<i64: 8, 2>}, {pipeline_mode = #tpu.pipeline_mode<synchronous>, transform_indices = @transform_1, window_bounds = array<i64: 2, 32>}, {pipeline_mode = #tpu.pipeline_mode<synchronous>, transform_indices = @transform_2, window_bounds = array<i64: 1, 32>}, {pipeline_mode = #tpu.pipeline_mode<synchronous>, transform_indices = @transform_3, window_bounds = array<i64: 2, 384>}, {pipeline_mode = #tpu.pipeline_mode<synchronous>, transform_indices = @transform_4, window_bounds = array<i64: 1, 384>}, {pipeline_mode = #tpu.pipeline_mode<synchronous>, transform_indices = @transform_5, window_bounds = array<i64: 3, 32, 96>}, {pipeline_mode = #tpu.pipeline_mode<synchronous>, transform_indices = @transform_6, window_bounds = array<i64: 3, 32, 32>}, {pipeline_mode = #tpu.pipeline_mode<synchronous>, transform_indices = @transform_7, window_bounds = array<i64: 32, 128>}, {pipeline_mode = #tpu.pipeline_mode<synchronous>, transform_indices = @transform_8, window_bounds = array<i64: 1, 128>}, {transform_indices = @transform_9, window_bounds = array<i64: 8, 128>}]} {
    %c0 = arith.constant 0 : index
    %c0_0 = arith.constant 0 : index
    %0 = vector.load %arg1[%c0, %c0_0] : memref<8x2xf32, #tpu.memory_space<vmem>>, vector<8x2xf32>
    %c0_1 = arith.constant 0 : index
    %c0_2 = arith.constant 0 : index
    %1 = vector.load %arg2[%c0_1, %c0_2] : memref<2x32xf32, #tpu.memory_space<vmem>>, vector<2x32xf32>
    %cst = arith.constant dense<0.000000e+00> : vector<8x32xf32>
    %2 = tpu.matmul %0, %1, %cst {dimension_numbers = #tpu.dot_dimension_numbers<[1], [0], [0], [1], [0, 0, 1, 1], [], []>} : vector<8x2xf32>, vector<2x32xf32>, vector<8x32xf32> -> vector<8x32xf32>
    %c0_3 = arith.constant 0 : index
    %c0_4 = arith.constant 0 : index
    %3 = vector.load %arg3[%c0_3, %c0_4] : memref<1x32xf32, #tpu.memory_space<vmem>>, vector<1x32xf32>
    %4 = vector.broadcast %3 : vector<1x32xf32> to vector<8x32xf32>
    %5 = arith.addf %2, %4 : vector<8x32xf32>
    %6 = arith.negf %5 : vector<8x32xf32>
    %7 = math.exp %6 : vector<8x32xf32>
    %cst_5 = arith.constant 1.000000e+00 : f32
    %8 = vector.broadcast %cst_5 : f32 to vector<8x32xf32>
    %9 = arith.addf %8, %7 : vector<8x32xf32>
    %10 = arith.divf %8, %9 : vector<8x32xf32>
    %c0_6 = arith.constant 0 : index
    %c0_7 = arith.constant 0 : index
    %11 = vector.load %arg4[%c0_6, %c0_7] : memref<2x384xf32, #tpu.memory_space<vmem>>, vector<2x384xf32>
    %cst_8 = arith.constant dense<0.000000e+00> : vector<8x384xf32>
    %12 = tpu.matmul %0, %11, %cst_8 {dimension_numbers = #tpu.dot_dimension_numbers<[1], [0], [0], [1], [0, 0, 1, 1], [], []>} : vector<8x2xf32>, vector<2x384xf32>, vector<8x384xf32> -> vector<8x384xf32>
    %c0_9 = arith.constant 0 : index
    %c0_10 = arith.constant 0 : index
    %13 = vector.load %arg5[%c0_9, %c0_10] : memref<1x384xf32, #tpu.memory_space<vmem>>, vector<1x384xf32>
    %14 = vector.broadcast %13 : vector<1x384xf32> to vector<8x384xf32>
    %15 = arith.addf %12, %14 : vector<8x384xf32>
    %16 = vector.extract_strided_slice %15 {offsets = [0, 0], sizes = [8, 32], strides = [1, 1]} : vector<8x384xf32> to vector<8x32xf32>
    %17 = vector.extract_strided_slice %15 {offsets = [0, 32], sizes = [8, 32], strides = [1, 1]} : vector<8x384xf32> to vector<8x32xf32>
    %18 = vector.extract_strided_slice %15 {offsets = [0, 64], sizes = [8, 32], strides = [1, 1]} : vector<8x384xf32> to vector<8x32xf32>
    %19 = vector.extract_strided_slice %15 {offsets = [0, 96], sizes = [8, 32], strides = [1, 1]} : vector<8x384xf32> to vector<8x32xf32>
    %c0_11 = arith.constant 0 : index
    %c0_12 = arith.constant 0 : index
    %c0_13 = arith.constant 0 : index
    %20 = vector.load %arg6[%c0_11, %c0_12, %c0_13] : memref<3x32x96xf32, #tpu.memory_space<vmem>>, vector<1x32x96xf32>
    %21 = vector.shape_cast %20 : vector<1x32x96xf32> to vector<32x96xf32>
    %cst_14 = arith.constant dense<0.000000e+00> : vector<8x96xf32>
    %22 = tpu.matmul %10, %21, %cst_14 {dimension_numbers = #tpu.dot_dimension_numbers<[1], [0], [0], [1], [0, 0, 1, 1], [], []>} : vector<8x32xf32>, vector<32x96xf32>, vector<8x96xf32> -> vector<8x96xf32>
    %23 = vector.extract_strided_slice %22 {offsets = [0, 0], sizes = [8, 32], strides = [1, 1]} : vector<8x96xf32> to vector<8x32xf32>
    %24 = arith.addf %16, %23 : vector<8x32xf32>
    %25 = arith.negf %24 : vector<8x32xf32>
    %26 = math.exp %25 : vector<8x32xf32>
    %cst_15 = arith.constant 1.000000e+00 : f32
    %27 = vector.broadcast %cst_15 : f32 to vector<8x32xf32>
    %28 = arith.addf %27, %26 : vector<8x32xf32>
    %29 = arith.divf %27, %28 : vector<8x32xf32>
    %30 = vector.extract_strided_slice %22 {offsets = [0, 32], sizes = [8, 32], strides = [1, 1]} : vector<8x96xf32> to vector<8x32xf32>
    %31 = arith.addf %17, %30 : vector<8x32xf32>
    %32 = arith.negf %31 : vector<8x32xf32>
    %33 = math.exp %32 : vector<8x32xf32>
    %cst_16 = arith.constant 1.000000e+00 : f32
    %34 = vector.broadcast %cst_16 : f32 to vector<8x32xf32>
    %35 = arith.addf %34, %33 : vector<8x32xf32>
    %36 = arith.divf %34, %35 : vector<8x32xf32>
    %37 = vector.extract_strided_slice %22 {offsets = [0, 64], sizes = [8, 32], strides = [1, 1]} : vector<8x96xf32> to vector<8x32xf32>
    %38 = arith.addf %18, %37 : vector<8x32xf32>
    %39 = arith.negf %38 : vector<8x32xf32>
    %40 = math.exp %39 : vector<8x32xf32>
    %cst_17 = arith.constant 1.000000e+00 : f32
    %41 = vector.broadcast %cst_17 : f32 to vector<8x32xf32>
    %42 = arith.addf %41, %40 : vector<8x32xf32>
    %43 = arith.divf %41, %42 : vector<8x32xf32>
    %44 = arith.mulf %10, %43 : vector<8x32xf32>
    %c0_18 = arith.constant 0 : index
    %c0_19 = arith.constant 0 : index
    %c0_20 = arith.constant 0 : index
    %45 = vector.load %arg7[%c0_18, %c0_19, %c0_20] : memref<3x32x32xf32, #tpu.memory_space<vmem>>, vector<1x32x32xf32>
    %46 = vector.shape_cast %45 : vector<1x32x32xf32> to vector<32x32xf32>
    %cst_21 = arith.constant dense<0.000000e+00> : vector<8x32xf32>
    %47 = tpu.matmul %44, %46, %cst_21 {dimension_numbers = #tpu.dot_dimension_numbers<[1], [0], [0], [1], [0, 0, 1, 1], [], []>} : vector<8x32xf32>, vector<32x32xf32>, vector<8x32xf32> -> vector<8x32xf32>
    %48 = arith.addf %19, %47 : vector<8x32xf32>
    %49 = arith.negf %48 : vector<8x32xf32>
    %50 = math.exp %49 : vector<8x32xf32>
    %cst_22 = arith.constant 1.000000e+00 : f32
    %51 = vector.broadcast %cst_22 : f32 to vector<8x32xf32>
    %52 = arith.addf %51, %50 : vector<8x32xf32>
    %53 = arith.divf %51, %52 : vector<8x32xf32>
    %cst_23 = arith.constant 1.000000e+00 : f32
    %54 = vector.broadcast %cst_23 : f32 to vector<8x32xf32>
    %55 = arith.subf %54, %36 : vector<8x32xf32>
    %56 = arith.mulf %55, %53 : vector<8x32xf32>
    %57 = arith.mulf %29, %10 : vector<8x32xf32>
    %58 = arith.addf %56, %57 : vector<8x32xf32>
    %59 = vector.extract_strided_slice %15 {offsets = [0, 128], sizes = [8, 32], strides = [1, 1]} : vector<8x384xf32> to vector<8x32xf32>
    %60 = vector.extract_strided_slice %15 {offsets = [0, 160], sizes = [8, 32], strides = [1, 1]} : vector<8x384xf32> to vector<8x32xf32>
    %61 = vector.extract_strided_slice %15 {offsets = [0, 192], sizes = [8, 32], strides = [1, 1]} : vector<8x384xf32> to vector<8x32xf32>
    %62 = vector.extract_strided_slice %15 {offsets = [0, 224], sizes = [8, 32], strides = [1, 1]} : vector<8x384xf32> to vector<8x32xf32>
    %c1 = arith.constant 1 : index
    %c0_24 = arith.constant 0 : index
    %c0_25 = arith.constant 0 : index
    %63 = vector.load %arg6[%c1, %c0_24, %c0_25] : memref<3x32x96xf32, #tpu.memory_space<vmem>>, vector<1x32x96xf32>
    %64 = vector.shape_cast %63 : vector<1x32x96xf32> to vector<32x96xf32>
    %cst_26 = arith.constant dense<0.000000e+00> : vector<8x96xf32>
    %65 = tpu.matmul %58, %64, %cst_26 {dimension_numbers = #tpu.dot_dimension_numbers<[1], [0], [0], [1], [0, 0, 1, 1], [], []>} : vector<8x32xf32>, vector<32x96xf32>, vector<8x96xf32> -> vector<8x96xf32>
    %66 = vector.extract_strided_slice %65 {offsets = [0, 0], sizes = [8, 32], strides = [1, 1]} : vector<8x96xf32> to vector<8x32xf32>
    %67 = arith.addf %59, %66 : vector<8x32xf32>
    %68 = arith.negf %67 : vector<8x32xf32>
    %69 = math.exp %68 : vector<8x32xf32>
    %cst_27 = arith.constant 1.000000e+00 : f32
    %70 = vector.broadcast %cst_27 : f32 to vector<8x32xf32>
    %71 = arith.addf %70, %69 : vector<8x32xf32>
    %72 = arith.divf %70, %71 : vector<8x32xf32>
    %73 = vector.extract_strided_slice %65 {offsets = [0, 32], sizes = [8, 32], strides = [1, 1]} : vector<8x96xf32> to vector<8x32xf32>
    %74 = arith.addf %60, %73 : vector<8x32xf32>
    %75 = arith.negf %74 : vector<8x32xf32>
    %76 = math.exp %75 : vector<8x32xf32>
    %cst_28 = arith.constant 1.000000e+00 : f32
    %77 = vector.broadcast %cst_28 : f32 to vector<8x32xf32>
    %78 = arith.addf %77, %76 : vector<8x32xf32>
    %79 = arith.divf %77, %78 : vector<8x32xf32>
    %80 = vector.extract_strided_slice %65 {offsets = [0, 64], sizes = [8, 32], strides = [1, 1]} : vector<8x96xf32> to vector<8x32xf32>
    %81 = arith.addf %61, %80 : vector<8x32xf32>
    %82 = arith.negf %81 : vector<8x32xf32>
    %83 = math.exp %82 : vector<8x32xf32>
    %cst_29 = arith.constant 1.000000e+00 : f32
    %84 = vector.broadcast %cst_29 : f32 to vector<8x32xf32>
    %85 = arith.addf %84, %83 : vector<8x32xf32>
    %86 = arith.divf %84, %85 : vector<8x32xf32>
    %87 = arith.mulf %58, %86 : vector<8x32xf32>
    %c1_30 = arith.constant 1 : index
    %c0_31 = arith.constant 0 : index
    %c0_32 = arith.constant 0 : index
    %88 = vector.load %arg7[%c1_30, %c0_31, %c0_32] : memref<3x32x32xf32, #tpu.memory_space<vmem>>, vector<1x32x32xf32>
    %89 = vector.shape_cast %88 : vector<1x32x32xf32> to vector<32x32xf32>
    %cst_33 = arith.constant dense<0.000000e+00> : vector<8x32xf32>
    %90 = tpu.matmul %87, %89, %cst_33 {dimension_numbers = #tpu.dot_dimension_numbers<[1], [0], [0], [1], [0, 0, 1, 1], [], []>} : vector<8x32xf32>, vector<32x32xf32>, vector<8x32xf32> -> vector<8x32xf32>
    %91 = arith.addf %62, %90 : vector<8x32xf32>
    %92 = arith.negf %91 : vector<8x32xf32>
    %93 = math.exp %92 : vector<8x32xf32>
    %cst_34 = arith.constant 1.000000e+00 : f32
    %94 = vector.broadcast %cst_34 : f32 to vector<8x32xf32>
    %95 = arith.addf %94, %93 : vector<8x32xf32>
    %96 = arith.divf %94, %95 : vector<8x32xf32>
    %cst_35 = arith.constant 1.000000e+00 : f32
    %97 = vector.broadcast %cst_35 : f32 to vector<8x32xf32>
    %98 = arith.subf %97, %79 : vector<8x32xf32>
    %99 = arith.mulf %98, %96 : vector<8x32xf32>
    %100 = arith.mulf %72, %58 : vector<8x32xf32>
    %101 = arith.addf %99, %100 : vector<8x32xf32>
    %102 = vector.extract_strided_slice %15 {offsets = [0, 256], sizes = [8, 32], strides = [1, 1]} : vector<8x384xf32> to vector<8x32xf32>
    %103 = vector.extract_strided_slice %15 {offsets = [0, 288], sizes = [8, 32], strides = [1, 1]} : vector<8x384xf32> to vector<8x32xf32>
    %104 = vector.extract_strided_slice %15 {offsets = [0, 320], sizes = [8, 32], strides = [1, 1]} : vector<8x384xf32> to vector<8x32xf32>
    %105 = vector.extract_strided_slice %15 {offsets = [0, 352], sizes = [8, 32], strides = [1, 1]} : vector<8x384xf32> to vector<8x32xf32>
    %c2 = arith.constant 2 : index
    %c0_36 = arith.constant 0 : index
    %c0_37 = arith.constant 0 : index
    %106 = vector.load %arg6[%c2, %c0_36, %c0_37] : memref<3x32x96xf32, #tpu.memory_space<vmem>>, vector<1x32x96xf32>
    %107 = vector.shape_cast %106 : vector<1x32x96xf32> to vector<32x96xf32>
    %cst_38 = arith.constant dense<0.000000e+00> : vector<8x96xf32>
    %108 = tpu.matmul %101, %107, %cst_38 {dimension_numbers = #tpu.dot_dimension_numbers<[1], [0], [0], [1], [0, 0, 1, 1], [], []>} : vector<8x32xf32>, vector<32x96xf32>, vector<8x96xf32> -> vector<8x96xf32>
    %109 = vector.extract_strided_slice %108 {offsets = [0, 0], sizes = [8, 32], strides = [1, 1]} : vector<8x96xf32> to vector<8x32xf32>
    %110 = arith.addf %102, %109 : vector<8x32xf32>
    %111 = arith.negf %110 : vector<8x32xf32>
    %112 = math.exp %111 : vector<8x32xf32>
    %cst_39 = arith.constant 1.000000e+00 : f32
    %113 = vector.broadcast %cst_39 : f32 to vector<8x32xf32>
    %114 = arith.addf %113, %112 : vector<8x32xf32>
    %115 = arith.divf %113, %114 : vector<8x32xf32>
    %116 = vector.extract_strided_slice %108 {offsets = [0, 32], sizes = [8, 32], strides = [1, 1]} : vector<8x96xf32> to vector<8x32xf32>
    %117 = arith.addf %103, %116 : vector<8x32xf32>
    %118 = arith.negf %117 : vector<8x32xf32>
    %119 = math.exp %118 : vector<8x32xf32>
    %cst_40 = arith.constant 1.000000e+00 : f32
    %120 = vector.broadcast %cst_40 : f32 to vector<8x32xf32>
    %121 = arith.addf %120, %119 : vector<8x32xf32>
    %122 = arith.divf %120, %121 : vector<8x32xf32>
    %123 = vector.extract_strided_slice %108 {offsets = [0, 64], sizes = [8, 32], strides = [1, 1]} : vector<8x96xf32> to vector<8x32xf32>
    %124 = arith.addf %104, %123 : vector<8x32xf32>
    %125 = arith.negf %124 : vector<8x32xf32>
    %126 = math.exp %125 : vector<8x32xf32>
    %cst_41 = arith.constant 1.000000e+00 : f32
    %127 = vector.broadcast %cst_41 : f32 to vector<8x32xf32>
    %128 = arith.addf %127, %126 : vector<8x32xf32>
    %129 = arith.divf %127, %128 : vector<8x32xf32>
    %130 = arith.mulf %101, %129 : vector<8x32xf32>
    %c2_42 = arith.constant 2 : index
    %c0_43 = arith.constant 0 : index
    %c0_44 = arith.constant 0 : index
    %131 = vector.load %arg7[%c2_42, %c0_43, %c0_44] : memref<3x32x32xf32, #tpu.memory_space<vmem>>, vector<1x32x32xf32>
    %132 = vector.shape_cast %131 : vector<1x32x32xf32> to vector<32x32xf32>
    %cst_45 = arith.constant dense<0.000000e+00> : vector<8x32xf32>
    %133 = tpu.matmul %130, %132, %cst_45 {dimension_numbers = #tpu.dot_dimension_numbers<[1], [0], [0], [1], [0, 0, 1, 1], [], []>} : vector<8x32xf32>, vector<32x32xf32>, vector<8x32xf32> -> vector<8x32xf32>
    %134 = arith.addf %105, %133 : vector<8x32xf32>
    %135 = arith.negf %134 : vector<8x32xf32>
    %136 = math.exp %135 : vector<8x32xf32>
    %cst_46 = arith.constant 1.000000e+00 : f32
    %137 = vector.broadcast %cst_46 : f32 to vector<8x32xf32>
    %138 = arith.addf %137, %136 : vector<8x32xf32>
    %139 = arith.divf %137, %138 : vector<8x32xf32>
    %cst_47 = arith.constant 1.000000e+00 : f32
    %140 = vector.broadcast %cst_47 : f32 to vector<8x32xf32>
    %141 = arith.subf %140, %122 : vector<8x32xf32>
    %142 = arith.mulf %141, %139 : vector<8x32xf32>
    %143 = arith.mulf %115, %101 : vector<8x32xf32>
    %144 = arith.addf %142, %143 : vector<8x32xf32>
    %c0_48 = arith.constant 0 : index
    %c0_49 = arith.constant 0 : index
    %145 = vector.load %arg8[%c0_48, %c0_49] : memref<32x128xf32, #tpu.memory_space<vmem>>, vector<32x128xf32>
    %cst_50 = arith.constant dense<0.000000e+00> : vector<8x128xf32>
    %146 = tpu.matmul %144, %145, %cst_50 {dimension_numbers = #tpu.dot_dimension_numbers<[1], [0], [0], [1], [0, 0, 1, 1], [], []>} : vector<8x32xf32>, vector<32x128xf32>, vector<8x128xf32> -> vector<8x128xf32>
    %c0_51 = arith.constant 0 : index
    %c0_52 = arith.constant 0 : index
    %147 = vector.load %arg9[%c0_51, %c0_52] : memref<1x128xf32, #tpu.memory_space<vmem>>, vector<1x128xf32>
    %148 = vector.broadcast %147 : vector<1x128xf32> to vector<8x128xf32>
    %149 = arith.addf %146, %148 : vector<8x128xf32>
    %c0_53 = arith.constant 0 : index
    %c0_54 = arith.constant 0 : index
    %150 = vector.load %arg10[%c0_53, %c0_54] : memref<8x128xf32, #tpu.memory_space<vmem>>, vector<8x128xf32>
    tpu.vector_store %arg10[%c0_53, %c0_54], %149 {strides = array<i32>} : memref<8x128xf32, #tpu.memory_space<vmem>>, vector<8x128xf32>,
    return
  }
  func.func @transform_0(%arg0: i32) -> (i32, i32) {
    %c0_i32 = arith.constant 0 : i32
    %c0_i32_0 = arith.constant 0 : i32
    return %arg0, %c0_i32 : i32, i32
  }
  func.func @transform_1(%arg0: i32) -> (i32, i32) {
    %c0_i32 = arith.constant 0 : i32
    %c0_i32_0 = arith.constant 0 : i32
    %c0_i32_1 = arith.constant 0 : i32
    return %c0_i32, %c0_i32_0 : i32, i32
  }
  func.func @transform_2(%arg0: i32) -> (i32, i32) {
    %c0_i32 = arith.constant 0 : i32
    %c0_i32_0 = arith.constant 0 : i32
    %c0_i32_1 = arith.constant 0 : i32
    return %c0_i32, %c0_i32_0 : i32, i32
  }
  func.func @transform_3(%arg0: i32) -> (i32, i32) {
    %c0_i32 = arith.constant 0 : i32
    %c0_i32_0 = arith.constant 0 : i32
    %c0_i32_1 = arith.constant 0 : i32
    return %c0_i32, %c0_i32_0 : i32, i32
  }
  func.func @transform_4(%arg0: i32) -> (i32, i32) {
    %c0_i32 = arith.constant 0 : i32
    %c0_i32_0 = arith.constant 0 : i32
    %c0_i32_1 = arith.constant 0 : i32
    return %c0_i32, %c0_i32_0 : i32, i32
  }
  func.func @transform_5(%arg0: i32) -> (i32, i32, i32) {
    %c0_i32 = arith.constant 0 : i32
    %c0_i32_0 = arith.constant 0 : i32
    %c0_i32_1 = arith.constant 0 : i32
    %c0_i32_2 = arith.constant 0 : i32
    return %c0_i32, %c0_i32_0, %c0_i32_1 : i32, i32, i32
  }
  func.func @transform_6(%arg0: i32) -> (i32, i32, i32) {
    %c0_i32 = arith.constant 0 : i32
    %c0_i32_0 = arith.constant 0 : i32
    %c0_i32_1 = arith.constant 0 : i32
    %c0_i32_2 = arith.constant 0 : i32
    return %c0_i32, %c0_i32_0, %c0_i32_1 : i32, i32, i32
  }
  func.func @transform_7(%arg0: i32) -> (i32, i32) {
    %c0_i32 = arith.constant 0 : i32
    %c0_i32_0 = arith.constant 0 : i32
    %c0_i32_1 = arith.constant 0 : i32
    return %c0_i32, %c0_i32_0 : i32, i32
  }
  func.func @transform_8(%arg0: i32) -> (i32, i32) {
    %c0_i32 = arith.constant 0 : i32
    %c0_i32_0 = arith.constant 0 : i32
    %c0_i32_1 = arith.constant 0 : i32
    return %c0_i32, %c0_i32_0 : i32, i32
  }
  func.func @transform_9(%arg0: i32) -> (i32, i32) {
    %c0_i32 = arith.constant 0 : i32
    %c0_i32_0 = arith.constant 0 : i32
    return %arg0, %c0_i32 : i32, i32
  }
}

</mosaic_0001>

<bundles_post_ra>
// kernel: tpu_custom_call.1
= control target key start
LH: loop header
LB: loop body
LE: loop exit
PB: predicated region body
PF: predicated region fallthrough
CT: control target
= control target key end

     0   :  { %14 = vsyncpa [#allocation3], 0  ;;  %s2158_s0 = inlined_call_operand.vmem [shape: f32[16,2], index: 0, kind: input, shape index: {}]   ;;  %s2159_s1 = inlined_call_operand.vmem [shape: f32[2,32], index: 1, kind: input, shape index: {}]   ;;  %s2160_s2 = inlined_call_operand.vmem [shape: f32[1,32], index: 2, kind: input, shape index: {}]   ;;  %s2161_s3 = inlined_call_operand.vmem [shape: f32[2,384], index: 3, kind: input, shape index: {}]   ;;  %s2162_s4 = inlined_call_operand.vmem [shape: f32[1,384], index: 4, kind: input, shape index: {}]   ;;  %s2163_s5 = inlined_call_operand.hbm [shape: f32[3,32,96], index: 5, kind: input, shape index: {}]   ;;  %s2164_s6 = inlined_call_operand.hbm [shape: f32[3,32,32], index: 6, kind: input, shape index: {}]   ;;  %s2165_s7 = inlined_call_operand.hbm [shape: f32[32,128], index: 7, kind: input, shape index: {}]   ;;  %s2166_s8 = inlined_call_operand.vmem [shape: f32[1,128], index: 8, kind: input, shape index: {}]   ;;  %s2167_s9 = inlined_call_operand.hbm [shape: f32[16,128], index: 9, kind: output, shape index: {}]  }
   0x1   :  { %15 = vsyncpa [#allocation6], 0 }
   0x2   :  { %16 = vsyncpa [#allocation4], 0 }
   0x3   :  { %18 = vsyncpa [#allocation4 + $0x1], 0  ;;  %s1902_s30 = smov 0   ;;  %s1904_s10 = smov 0  }
   0x4   :  { %s1906_s11 = smov 0   ;;  %s1908_s12 = smov 0  }
   0x5 LB: > { %s1923_s13 = sadd.s32 4294967295, %s1838_s12   ;;  %s1420_s14 = sadd.s32 4294967294, %s1838_s12   ;;  %s1838_s12 = sphi %s1908_s12, %s2183_s12   ;;  %s1834_s11 = sphi %s1906_s11, %s2182_s11   ;;  %s1830_s10 = sphi %s1904_s10, %s2181_s10   ;;  %s1826_s30 = sphi %s1902_s30, %s2180_s30  }
   0x6   : > { %s1927_s15 = sadd.s32 1, %s1838_s12   ;;  %s225_s16 = sadd.s32 1, %s1834_s11 }
   0x7   : > { %s222_s17 = ssub.s32 %s1838_s12, %s1927_s15  ;;  %p235_p0 = scmp.ne.s32.totalorder %s1834_s11, %s1830_s10 }
   0x8   : > { %p223_p1 = scmp.eq.s32.totalorder %s222_s17, 0  ;;  %p236_p2 = scmp.eq.s32.totalorder %s1923_s13, 1 }
   0x9   : > { %p241_p3 = scmp.ne.s32.totalorder %s1830_s10, %s1826_s30  ;;  %p242_p4 = scmp.eq.s32.totalorder %s1420_s14, 1 }
   0xa   : > { %s1938_s18 = scalar_select %p223_p1, %s1834_s11, %s225_s16  }
   0xb   : > { %p1940_p5 = por %p236_p2, %p235_p0  ;;  %p1944_p6 = por %p242_p4, %p241_p3 }
   0xc   : > { %p1421_p7 = scmp.ge.s32.totalorder %s1838_s12, 1  ;;  %p249_p8 = scmp.lt.s32.totalorder %s1838_s12, 3 }
   0xd   : > { %s2170_s19 = scalar_select %p1940_p5, 1, 0 }
   0xe   : > { %s2171_s20 = scalar_select %p1944_p6, 1, 0 }
   0xf   : > { %p2168_p9 = scmp.eq.s32.totalorder %s1923_s13, 0  ;;  %p1951_p10 = pnand %p1421_p7, %p249_p8 }
  0x10   : > { %s1840_s22 = smov [#allocation5]   ;;  %s1841_s25 = smov [#allocation2]  }
  0x11   : > { %p1599_p11 = pneg %p1951_p10  ;;  %s286_s23 = sshll.u32 %s1840_s22, 4  ;;  %s287_s23 = int_to_ptr.vmem [resolvable:$true] %s286_s23 }
  0x12   : > { %s273_s26 = sshll.u32 %s1841_s25, 4  ;;  %s1842_s27 = smov [#allocation7]   ;;  %s274_s26 = int_to_ptr.vmem [resolvable:$true] %s273_s26 }
  0x13   : > { %p1959_p12 = pnand %p2168_p9, %p1599_p11  ;;  %s299_s28 = sshll.u32 %s1842_s27, 4  ;;  %s300_s28 = int_to_ptr.vmem [resolvable:$true] %s299_s28 }
  0x14   : > { %s1703_s29 = scalar_lea.vmem %s287_s23, 1536  ;;  %p1711_p3 = scmp.lt.s32.totalorder %s287_s23, %s287_s23 }
  0x15   : > { %p1694_p13 = pneg %p1959_p12  ;;  %p1704_p0 = scmp.ne.s32.totalorder %s287_s23, %s1703_s29 }
  0x16   : > { %p1712_p4 = scmp.lt.s32.totalorder %s1703_s29, %s1703_s29 }
  0x17   : > { %p1706_p1 = pnand %p1704_p0, %p1694_p13 }
  0x18   : > { %p1713_p7 = por %p1712_p4, %p1711_p3 }
  0x19   : > { %p1707_p2 = pneg %p1706_p1 }
  0x1b   : > { %p1714_p8 = pnand %p1713_p7, %p1707_p2 }
  0x1d   : > { %1717 = shalt.err (!%p1714_p8)
}
  0x1e   : > { %s1843_s14 = smov 128   ;;  %s1844_s16 = smov 8  }
  0x1f   : > { %1605 = dma.hbm_to_vmem [thread:$0]  (!%p1959_p12), %s2164_s6, 1536, %s287_s23, [#allocation6], %s1843_s14, %s1843_s14, %s1844_s16  }
  0x20   : > { %s1729_s25 = scalar_lea.vmem %s274_s26, 1536  ;;  %p1737_p9 = scmp.lt.s32.totalorder %s274_s26, %s274_s26 }
  0x21   : > { %p1730_p11 = scmp.ne.s32.totalorder %s274_s26, %s1729_s25  ;;  %p1738_p6 = scmp.lt.s32.totalorder %s1729_s25, %s1729_s25 }
  0x23   : > { %p1732_p0 = pnand %p1730_p11, %p1694_p13  ;;  %p1739_p3 = por %p1738_p6, %p1737_p9 }
  0x25   : > { %p1733_p1 = pneg %p1732_p0 }
  0x27   : > { %p1740_p2 = pnand %p1739_p3, %p1733_p1 }
  0x29   : > { %1743 = shalt.err (!%p1740_p2)
}
  0x2a   : > { %1602 = dma.hbm_to_vmem [thread:$0]  (!%p1959_p12), %s2163_s5, 1536, %s274_s26, [#allocation3], %s1843_s14, %s1843_s14, %s1844_s16  }
  0x2b   : > { %s1755_s23 = scalar_lea.vmem %s300_s28, 512  ;;  %p1763_p11 = scmp.lt.s32.totalorder %s300_s28, %s300_s28 }
  0x2c   : > { %p1756_p4 = scmp.ne.s32.totalorder %s300_s28, %s1755_s23  ;;  %p1764_p0 = scmp.lt.s32.totalorder %s1755_s23, %s1755_s23 }
  0x2e   : > { %p1758_p7 = pnand %p1756_p4, %p1694_p13  ;;  %p1765_p5 = por %p1764_p0, %p1763_p11 }
  0x30   : > { %p1759_p8 = pneg %p1758_p7 }
  0x32   : > { %p1766_p6 = pnand %p1765_p5, %p1759_p8 }
  0x34   : > { %1769 = shalt.err (!%p1766_p6)
}
  0x35   : > { %1608 = dma.hbm_to_vmem [thread:$0]  (!%p1959_p12), %s2165_s7, 512, %s300_s28, [#allocation6], %s1843_s14, %s1843_s14, %s1844_s16  }
  0x36   : > { %325 = sbr.rel (%p1951_p10) target bundleno = 3497 (0xda9), region = 56  ;;  %p2174_p9 = scmp.eq.s32.totalorder (!%p1951_p10), %s1923_s13, 0 }
  0x3b   : > { %1813 = dma.done.wait (%p2174_p9), [#allocation3], 1536   ;;  %p2175_p13 = pmov %p2174_p9 }
  0x3c   : > { %p2176_p1 = pmov %p2174_p9 }
  0x3d   : > { %1815 = vsyncadd (%p2175_p13), [#allocation3], 4294965760 }
  0x3e   : > { %1817 = dma.done.wait (%p2176_p1), [#allocation6], 2048   ;;  %p2177_p5 = pmov %p2176_p1 }
  0x3f   : > { %p368_p3 = scmp.lt.s32.totalorder %s1923_s13, 1  ;;  %v1845_v0 = vmov 0.0   ;;  %vm1846_vm0 = vmmov 0   ;;  %vm385_vm1 = vcmask 1041408   ;;  %vm381_vm2 = vcmask 15360   ;;  %v650_v14 = vld [vmem:[#allocation2 + $0x18] sm:$0xff] }
  0x40   : > { %1819 = vsyncadd (%p2177_p5), [#allocation6], 4294965248  ;;  %1498 = vmatprep.subr.mxu0 %v1845_v0  ;;  %1500 = vmatprep.mubr.msk.f32.mxu0 %vm1846_vm0, %v1845_v0  ;;  %v373_v1 = vld [vmem:[%s2159_s1] sm:$0x3]  ;;  %v468_v3 = vlaneseq  ;;  %v1847_v4 = vmov 1983009808  }
  0x41   : > { %s369_s21 = scalar_select %p368_p3, %s1923_s13, 1  ;;  %570 = vmatprep.mubr.f32.mxu1 %v1845_v0  ;;  %1499 = vmatpush3.msk.msra.mxu0 %vm385_vm1, %v373_v1  ;;  %v486_v5 = vunpack.c.l.s4 %v1847_v4  ;;  %v465_v9 = vld [vmem:[%s2161_s3] sm:$0x3f]  ;;  %v649_v15 = vld [vmem:[#allocation2 + $0x10] sm:$0xff]  ;;  %v648_v16 = vld [vmem:[#allocation2 + $0x8] sm:$0xff]  ;;  %vm651_vm3 = vcmask 261120  }
  0x42   : > { %1503 = vmatprep.subr.mxu0 %v1845_v0  ;;  %v2016_v6 = vshrl.u32 %v468_v3, 7  ;;  %v484_v11 = vcombine.high %v465_v9, %v465_v9  ;;  %v647_v17 = vld [vmem:[#allocation2] sm:$0xff]  ;;  %v740_v26 = vld [vmem:[#allocation5 + $0x18] sm:$0xff]  ;;  %v739_v27 = vld [vmem:[#allocation5 + $0x10] sm:$0xff]  ;;  %s1849_s26 = smov 96   ;;  %s1850_s28 = smov 32  }
  0x43   : > { %s1431_s24 = sshll.u32 %s369_s21, 3  ;;  %v487_v7 = vunpack.c.0.s8 %v486_v5  ;;  %v1432_v18 = vld [vmem:[%s2160_s2] ss:$0 sm:$0xff]  ;;  %v738_v28 = vld [vmem:[#allocation5 + $0x8] sm:$0xff]  ;;  %v841_v54 = vld [vmem:[#allocation2 + $0x38] sm:$0xff]  ;;  %s1456_s29 = sshll.u32 %s1923_s13, 7 }
  0x44   : > { %s371_s14 = scalar_lea.vmem %s2158_s0, %s1431_s24  ;;  %v470_v29 = vsub.s32 0, %v2016_v6  ;;  %v2053_v30 = vld [vmem:[%s2162_s4] sm:$0x7]  ;;  %s1848_s24 = smov 64   ;;  %v840_v55 = vld [vmem:[#allocation2 + $0x30] sm:$0xff]  ;;  %v839_v56 = vld [vmem:[#allocation2 + $0x28] sm:$0xff] }
  0x45   : > { %v372_v2 = vld [vmem:[%s371_s14] sm:$0xff]  ;;  %v490_v8 = vsub.s32 %v487_v7, %v2016_v6  ;;  %v474_v3 = vsub.s32 1, %v2016_v6  ;;  %s365_s14 = sand.u32 1, %s1830_s10   ;;  %p2178_p12 = scmp.ne.s32.totalorder %s2170_s19, 0 }
  0x46   : > { %1501 = vmatmul.mubr.msk.f32.vlgmr.msra.gmra.mxu0 %vm381_vm2, %v372_v2  ;;  %v471_v32 = vrot.slane %v2053_v30, %v470_v29  ;;  %v737_v41 = vld [vmem:[#allocation5] sm:$0xff]  ;;  %v1037_v29 = vld [vmem:[#allocation2 + $0x58] sm:$0xff]  ;;  %s1430_s16 = sshll.u32 %s365_s14, 3  ;;  %s1851_s25 = smov [#allocation8]  }
  0x47   : > { %1505 = vmatprep.mubr.msk.f32.mxu0 %vm1846_vm0, %v1845_v0  ;;  %v491_v10 = vrot.slane %v465_v9, %v490_v8  ;;  %v498_v13 = vrot.slane %v484_v11, %v490_v8  ;;  %v838_v57 = vld [vmem:[#allocation2 + $0x20] sm:$0xff]  ;;  %v475_v4 = vrot.slane %v2053_v30, %v474_v3  ;;  %v1230_v3 = vld [vmem:[#allocation7 + $0x8] sm:$0xff]  ;;  %s367_s23 = scalar_lea.vmem [#allocation8], %s1430_s16  ;;  %s1774_s13 = sshll.u32 %s1851_s25, 4  ;;  %s1775_s13 = int_to_ptr.vmem [resolvable:$false] %s1774_s13 }
  0x48   : > { %s1330_s17 = sshll.u32 %s367_s23, 4  ;;  %s1776_s16 = scalar_lea.vmem %s1775_s13, 256  ;;  %s1331_s17 = int_to_ptr.vmem [resolvable:$true] %s1330_s17 }
  0x49   : > { %v499_v12 = vcombine.high %v491_v10, %v491_v10  ;;  %1504 = vmatpush3.msk.msra.mxu0 %vm385_vm1, %v498_v13  ;;  %v933_v13 = vld [vmem:[#allocation5 + $0x38] sm:$0xff]  ;;  %p1777_p7 = scmp.lt.s32.totalorder %s1331_s17, %s1775_s13 }
  0x4a   : > { %1506 = vmatmul.mubr.msk.f32.vlgmr.msra.gmra.mxu0 %vm381_vm2, %v372_v2  ;;  %1519 = vmatprep.subr.mxu0 %v1845_v0 }
  0x4b   : > { %1436 = vmatprep.subr.msk.mxu1 %vm385_vm1, %v499_v12  ;;  %1527 = vmatprep.mubr.msk.f32.mxu0 %vm1846_vm0, %v1845_v0 }
  0x4c   : > { %1437 = vmatpush1.msk.msra.mxu1 %vm385_vm1, %v491_v10  ;;  %1520 = vmatpush3.msra.mxu0 %v740_v26 }
  0x4d   : > { %1438 = vmatmul.mubr.msk.f32.vlgmr.msra.gmra.mxu1 %vm381_vm2, %v372_v2  ;;  %1508 = vmatprep.subr.mxu1 %v1845_v0 }
  0x4e   : > { %1509 = vmatpush3.msra.mxu1 %v650_v14  ;;  %1516 = vmatprep.mubr.msk.f32.mxu1 %vm1846_vm0, %v1845_v0  ;;  %v932_v14 = vld [vmem:[#allocation5 + $0x30] sm:$0xff] }
  0x4f   : > { %1510 = vmatprep.subr.mxu1 %v1845_v0  ;;  %1521 = vmatprep.subr.mxu0 %v1845_v0 }
  0x50   : > { %1511 = vmatpush3.msra.mxu1 %v649_v15  ;;  %1522 = vmatpush3.msra.mxu0 %v739_v27  ;;  %v931_v15 = vld [vmem:[#allocation5 + $0x28] sm:$0xff] }
  0x51   : > { %1512 = vmatprep.subr.mxu1 %v1845_v0  ;;  %1523 = vmatprep.subr.mxu0 %v1845_v0 }
  0x52   : > { %1513 = vmatpush3.msra.mxu1 %v648_v16  ;;  %1524 = vmatpush3.msra.mxu0 %v738_v28  ;;  %v930_v16 = vld [vmem:[#allocation5 + $0x20] sm:$0xff] }
  0x53   : > { %1514 = vmatprep.subr.mxu1 %v1845_v0  ;;  %1525 = vmatprep.subr.mxu0 %v1845_v0 }
  0x54   : > { %1515 = vmatpush3.msra.mxu1 %v647_v17  ;;  %1526 = vmatpush3.msra.mxu0 %v737_v41  ;;  %v478_v41 = vsub.s32 2, %v2016_v6  ;;  %v1126_v6 = vld [vmem:[#allocation5 + $0x40] sm:$0xff] }
  0x55   : > { %1530 = vmatprep.subr.mxu1 %v1845_v0  ;;  %1541 = vmatprep.subr.mxu0 %v1845_v0 }
 0x106   : > { %v455_v19 = vpop.f32.mrf.mxu0 }
 0x107   : > { %v456_v20 = vadd.f32 %v1432_v18, %v455_v19 }
 0x108   : > { %v1502_v21 = vpop.f32.mrf.mxu0 }
 0x109   : > { %v1435_v22 = vmul.f32 -1.442695, %v456_v20 }
 0x10a   : > { %v2056_v42 = vpop.f32.mrf.mxu0 }
 0x10b   : > { %1664 = vpow2.f32 %v1435_v22 }
 0x10c   : > { %v1507_v43 = vpop.f32.mrf.mxu0 }
 0x10d   : > { %v572_v31 = vpop.f32.mrf.mxu1  ;;  %v479_v43 = vrot.slane %v2053_v30, %v478_v41 }
 0x10e   : > { %v573_v34 = vadd.f32 %v572_v31, %v471_v32  ;;  %v1036_v31 = vld [vmem:[#allocation2 + $0x50] sm:$0xff]  ;;  %v1035_v32 = vld [vmem:[#allocation2 + $0x48] sm:$0xff] }
 0x10f   : > { %v574_v33 = vpop.f32.mrf.mxu1 }
 0x110   : > { %v575_v5 = vadd.f32 %v574_v33, %v475_v4  ;;  %v1034_v33 = vld [vmem:[#allocation2 + $0x40] sm:$0xff] }
 0x111   : > { %v1229_v4 = vld [vmem:[#allocation7] sm:$0xff] }
 0x118   : > { %v1665_v23 = vpop.eup %1664 }
 0x119   : > { %v462_v24 = vadd.f32 1.0, %v1665_v23 }
 0x11b   : > { %1666 = vrcp.f32 %v462_v24 }
 0x128   : > { %v2040_v25 = vpop.eup %1666 }
 0x129   : > { %1517 = vmatmul.mubr.msk.f32.vlgmr.msra.gmra.mxu1 %vm651_vm3, %v2040_v25 }
 0x12a   : > { %1538 = vmatprep.mubr.msk.f32.mxu1 %vm1846_vm0, %v1845_v0  ;;  %1531 = vmatpush3.msra.mxu1 %v841_v54 }
 0x12b   : > { %1532 = vmatprep.subr.mxu1 %v1845_v0 }
 0x12c   : > { %1533 = vmatpush3.msra.mxu1 %v840_v55 }
 0x12d   : > { %1534 = vmatprep.subr.mxu1 %v1845_v0 }
 0x12e   : > { %1535 = vmatpush3.msra.mxu1 %v839_v56 }
 0x12f   : > { %1536 = vmatprep.subr.mxu1 %v1845_v0 }
 0x130   : > { %1537 = vmatpush3.msra.mxu1 %v838_v57 }
 0x131   : > { %1552 = vmatprep.subr.mxu1 %v1845_v0 }
 0x1e9   : > { %v721_v35 = vpop.f32.mrf.mxu1 }
 0x1ea   : > { %v725_v36 = vadd.f32 %v721_v35, %v573_v34 }
 0x1eb   : > { %v1518_v37 = vpop.f32.mrf.mxu1 }
 0x1ec   : > { %v1442_v38 = vmul.f32 -1.442695, %v725_v36 }
 0x1ee   : > { %1668 = vpow2.f32 %v1442_v38 }
 0x1fb   : > { %v1669_v39 = vpop.eup %1668 }
 0x1fc   : > { %v729_v40 = vadd.f32 1.0, %v1669_v39 }
 0x1fe   : > { %1670 = vrcp.f32 %v729_v40 }
 0x20b   : > { %v1671_v44 = vpop.eup %1670 }
 0x20c   : > { %733 = vrot.lane.b32.xlu0 %v1671_v44, %s1848_s24  ;;  %v831_v59 = vmul.f32 %v1671_v44, %v2040_v25  ;;  %v825_v61 = vsub.f32 1.0, %v1671_v44  ;;  %v644_v44 = vadd.f32 %v2056_v42, %v479_v43 }
 0x27e   : > { %v734_v45 = vpop.permute.xlu0 %733 }
 0x27f   : > { %v736_v46 = vmul.f32 %v2040_v25, %v734_v45 }
 0x281   : > { %1528 = vmatmul.mubr.msk.f32.vlgmr.msra.gmra.mxu0 %vm651_vm3, %v736_v46 }
 0x282   : > { %1549 = vmatprep.mubr.msk.f32.mxu0 %vm1846_vm0, %v1845_v0  ;;  %1542 = vmatpush3.msra.mxu0 %v933_v13 }
 0x283   : > { %1543 = vmatprep.subr.mxu0 %v1845_v0 }
 0x284   : > { %1544 = vmatpush3.msra.mxu0 %v932_v14 }
 0x285   : > { %1545 = vmatprep.subr.mxu0 %v1845_v0 }
 0x286   : > { %1546 = vmatpush3.msra.mxu0 %v931_v15 }
 0x287   : > { %1547 = vmatprep.subr.mxu0 %v1845_v0 }
 0x288   : > { %1548 = vmatpush3.msra.mxu0 %v930_v16 }
 0x289   : > { %1563 = vmatprep.subr.mxu0 %v1845_v0 }
 0x341   : > { %v810_v47 = vpop.f32.mrf.mxu0 }
 0x342   : > { %815 = vrot.lane.b32.xlu0 %v810_v47, %s1849_s26 }
 0x343   : > { %v1529_v48 = vpop.f32.mrf.mxu0 }
 0x3b4   : > { %v816_v49 = vpop.permute.xlu0 %815 }
 0x3b5   : > { %v818_v50 = vadd.f32 %v816_v49, %v573_v34 }
 0x3b7   : > { %v1444_v51 = vmul.f32 -1.442695, %v818_v50 }
 0x3b9   : > { %1672 = vpow2.f32 %v1444_v51  ;;  %v1129_v51 = vld [vmem:[#allocation5 + $0x58] sm:$0xff] }
 0x3c6   : > { %v1673_v52 = vpop.eup %1672 }
 0x3c7   : > { %v822_v53 = vadd.f32 1.0, %v1673_v52  ;;  %v1128_v52 = vld [vmem:[#allocation5 + $0x50] sm:$0xff] }
 0x3c9   : > { %1674 = vrcp.f32 %v822_v53  ;;  %v1127_v53 = vld [vmem:[#allocation5 + $0x48] sm:$0xff] }
 0x3d6   : > { %v1675_v58 = vpop.eup %1674 }
 0x3d7   : > { %827 = vrot.lane.b32.xlu1 %v1675_v58, %s1848_s24 }
 0x3db   : > { %833 = vrot.lane.b32.xlu1 %v831_v59, %s1850_s28 }
 0x449   : > { %v828_v60 = vpop.permute.xlu1 %827 }
 0x44a   : > { %v830_v62 = vmul.f32 %v828_v60, %v825_v61 }
 0x44d   : > { %v834_v63 = vpop.permute.xlu1 %833 }
 0x44e   : > { %v836_v1 = vadd.f32 %v834_v63, %v830_v62 }
 0x450   : > { %843 = vrot.lane.b32.xlu0 %v836_v1, %s1849_s26 }
 0x4c2   : > { %v844_v2 = vpop.permute.xlu0 %843 }
 0x4c3   : > { %1539 = vmatmul.mubr.msk.f32.vlgmr.msra.gmra.mxu1 %vm651_vm3, %v844_v2 }
 0x4c4   : > { %1560 = vmatprep.mubr.msk.f32.mxu1 %vm1846_vm0, %v1845_v0  ;;  %1553 = vmatpush3.msra.mxu1 %v1037_v29 }
 0x4c5   : > { %1554 = vmatprep.subr.mxu1 %v1845_v0 }
 0x4c6   : > { %1555 = vmatpush3.msra.mxu1 %v1036_v31 }
 0x4c7   : > { %1556 = vmatprep.subr.mxu1 %v1845_v0 }
 0x4c8   : > { %1557 = vmatpush3.msra.mxu1 %v1035_v32 }
 0x4c9   : > { %1558 = vmatprep.subr.mxu1 %v1845_v0 }
 0x4ca   : > { %1559 = vmatpush3.msra.mxu1 %v1034_v33 }
 0x4cb   : > { %1574 = vmatprep.subr.mxu1 %v1845_v0 }
 0x583   : > { %v913_v7 = vpop.f32.mrf.mxu1 }
 0x584   : > { %v917_v8 = vadd.f32 %v913_v7, %v575_v5 }
 0x585   : > { %v1540_v9 = vpop.f32.mrf.mxu1 }
 0x586   : > { %v1446_v10 = vmul.f32 -1.442695, %v917_v8 }
 0x588   : > { %1676 = vpow2.f32 %v1446_v10 }
 0x595   : > { %v1677_v11 = vpop.eup %1676 }
 0x596   : > { %v921_v12 = vadd.f32 1.0, %v1677_v11 }
 0x598   : > { %1678 = vrcp.f32 %v921_v12 }
 0x5a5   : > { %v1679_v17 = vpop.eup %1678 }
 0x5a6   : > { %925 = vrot.lane.b32.xlu1 %v1679_v17, %s1849_s26  ;;  %v1027_v23 = vmul.f32 %v1679_v17, %v844_v2  ;;  %v1020_v35 = vsub.f32 1.0, %v1679_v17  ;;  %v1231_v2 = vld [vmem:[#allocation7 + $0x10] sm:$0xff] }
 0x618   : > { %v926_v18 = vpop.permute.xlu1 %925 }
 0x619   : > { %v928_v19 = vmul.f32 %v926_v18, %v836_v1  ;;  %v1232_v1 = vld [vmem:[#allocation7 + $0x18] sm:$0xff] }
 0x61b   : > { %935 = vrot.lane.b32.xlu0 %v928_v19, %s1849_s26 }
 0x68d   : > { %v936_v20 = vpop.permute.xlu0 %935 }
 0x68e   : > { %1550 = vmatmul.mubr.msk.f32.vlgmr.msra.gmra.mxu0 %vm651_vm3, %v936_v20 }
 0x68f   : > { %1571 = vmatprep.mubr.msk.f32.mxu0 %vm1846_vm0, %v1845_v0  ;;  %1564 = vmatpush3.msra.mxu0 %v1129_v51 }
 0x690   : > { %1565 = vmatprep.subr.mxu0 %v1845_v0 }
 0x691   : > { %1566 = vmatpush3.msra.mxu0 %v1128_v52 }
 0x692   : > { %1567 = vmatprep.subr.mxu0 %v1845_v0 }
 0x693   : > { %1568 = vmatpush3.msra.mxu0 %v1127_v53 }
 0x694   : > { %1569 = vmatprep.subr.mxu0 %v1845_v0 }
 0x695   : > { %1570 = vmatpush3.msra.mxu0 %v1126_v6 }
 0x74e   : > { %v1005_v21 = vpop.f32.mrf.mxu0 }
 0x74f   : > { %1010 = vrot.lane.b32.xlu1 %v1005_v21, %s1849_s26 }
 0x750   : > { %v1551_v22 = vpop.f32.mrf.mxu0 }
 0x753   : > { %1029 = vrot.lane.b32.xlu1 %v1027_v23, %s1850_s28 }
 0x7c1   : > { %v1011_v24 = vpop.permute.xlu1 %1010 }
 0x7c2   : > { %v1013_v25 = vadd.f32 %v1011_v24, %v575_v5 }
 0x7c4   : > { %v1448_v26 = vmul.f32 -1.442695, %v1013_v25 }
 0x7c5   : > { %v1030_v38 = vpop.permute.xlu1 %1029 }
 0x7c6   : > { %1680 = vpow2.f32 %v1448_v26 }
 0x7d3   : > { %v1681_v27 = vpop.eup %1680 }
 0x7d4   : > { %v1017_v28 = vadd.f32 1.0, %v1681_v27 }
 0x7d6   : > { %1682 = vrcp.f32 %v1017_v28 }
 0x7e3   : > { %v1683_v34 = vpop.eup %1682 }
 0x7e4   : > { %1022 = vrot.lane.b32.xlu0 %v1683_v34, %s1848_s24 }
 0x856   : > { %v1023_v36 = vpop.permute.xlu0 %1022 }
 0x857   : > { %v1025_v37 = vmul.f32 %v1023_v36, %v1020_v35 }
 0x859   : > { %v1032_v39 = vadd.f32 %v1030_v38, %v1025_v37 }
 0x85b   : > { %1039 = vrot.lane.b32.xlu0 %v1032_v39, %s1849_s26 }
 0x8cd   : > { %v1040_v40 = vpop.permute.xlu0 %1039 }
 0x8ce   : > { %1561 = vmatmul.mubr.msk.f32.vlgmr.msra.gmra.mxu1 %vm651_vm3, %v1040_v40 }
 0x8cf   : > { %1582 = vmatprep.mubr.msk.f32.mxu1 %vm1846_vm0, %v1845_v0  ;;  %1575 = vmatpush3.msra.mxu1 %v1232_v1 }
 0x8d0   : > { %1576 = vmatprep.subr.mxu1 %v1845_v0 }
 0x8d1   : > { %1577 = vmatpush3.msra.mxu1 %v1231_v2 }
 0x8d2   : > { %1578 = vmatprep.subr.mxu1 %v1845_v0 }
 0x8d3   : > { %1579 = vmatpush3.msra.mxu1 %v1230_v3 }
 0x8d4   : > { %1580 = vmatprep.subr.mxu1 %v1845_v0  ;;  %v1453_v0 = vld [vmem:[%s2166_s8] ss:$0 sm:$0xff] }
 0x8d5   : > { %1581 = vmatpush3.msra.mxu1 %v1229_v4 }
 0x98e   : > { %v1109_v45 = vpop.f32.mrf.mxu1 }
 0x98f   : > { %v1113_v46 = vadd.f32 %v1109_v45, %v644_v44 }
 0x990   : > { %v1562_v47 = vpop.f32.mrf.mxu1 }
 0x991   : > { %v1450_v48 = vmul.f32 -1.442695, %v1113_v46 }
 0x993   : > { %1684 = vpow2.f32 %v1450_v48 }
 0x9a0   : > { %v1685_v49 = vpop.eup %1684 }
 0x9a1   : > { %v1117_v50 = vadd.f32 1.0, %v1685_v49 }
 0x9a3   : > { %1686 = vrcp.f32 %v1117_v50 }
 0x9b0   : > { %v1687_v30 = vpop.eup %1686 }
 0x9b1   : > { %1121 = vrot.lane.b32.xlu1 %v1687_v30, %s1849_s26  ;;  %v1223_v58 = vmul.f32 %v1687_v30, %v1040_v40  ;;  %v1216_v7 = vsub.f32 1.0, %v1687_v30 }
 0xa23   : > { %v1122_v42 = vpop.permute.xlu1 %1121 }
 0xa24   : > { %v1124_v54 = vmul.f32 %v1122_v42, %v1032_v39 }
 0xa26   : > { %1131 = vrot.lane.b32.xlu0 %v1124_v54, %s1849_s26 }
 0xa98   : > { %v1132_v55 = vpop.permute.xlu0 %1131 }
 0xa99   : > { %1572 = vmatmul.mubr.msk.f32.vlgmr.msra.gmra.mxu0 %vm651_vm3, %v1132_v55 }
 0xb59   : > { %v1201_v56 = vpop.f32.mrf.mxu0 }
 0xb5a   : > { %1206 = vrot.lane.b32.xlu1 %v1201_v56, %s1849_s26 }
 0xb5b   : > { %v1573_v57 = vpop.f32.mrf.mxu0 }
 0xb5e   : > { %1225 = vrot.lane.b32.xlu1 %v1223_v58, %s1850_s28  ;;  %s1770_s28 = scalar_lea.vmem %s1331_s17, 128 }
 0xb5f   : > { %p1771_p10 = scmp.ne.s32.totalorder %s1331_s17, %s1770_s28  ;;  %p1778_p8 = scmp.lt.s32.totalorder %s1776_s16, %s1770_s28 }
 0xb61   : > { %p1772_p2 = pnand %p1771_p10, %p2178_p12  ;;  %p1779_p11 = por %p1778_p8, %p1777_p7 }
 0xb63   : > { %p1773_p4 = pneg %p1772_p2 }
 0xb65   : > { %p1780_p0 = pnand %p1779_p11, %p1773_p4 }
 0xbcc   : > { %v1207_v59 = vpop.permute.xlu1 %1206 }
 0xbcd   : > { %v1209_v60 = vadd.f32 %v1207_v59, %v644_v44 }
 0xbcf   : > { %v1452_v61 = vmul.f32 -1.442695, %v1209_v60 }
 0xbd0   : > { %v1226_v10 = vpop.permute.xlu1 %1225 }
 0xbd1   : > { %1688 = vpow2.f32 %v1452_v61 }
 0xbde   : > { %v1689_v62 = vpop.eup %1688 }
 0xbdf   : > { %v1213_v63 = vadd.f32 1.0, %v1689_v62 }
 0xbe1   : > { %1690 = vrcp.f32 %v1213_v63 }
 0xbee   : > { %v1691_v5 = vpop.eup %1690 }
 0xbef   : > { %1218 = vrot.lane.b32.xlu0 %v1691_v5, %s1848_s24  ;;  %s2123_s24 = scalar_lea.hbm %s2167_s9, %s1456_s29 }
 0xc61   : > { %v1219_v8 = vpop.permute.xlu0 %1218 }
 0xc62   : > { %v1221_v9 = vmul.f32 %v1219_v8, %v1216_v7 }
 0xc64   : > { %v1228_v11 = vadd.f32 %v1226_v10, %v1221_v9 }
 0xc66   : > { %1241 = vrot.lane.b32.xlu0 %v1228_v11, %s1849_s26  ;;  %s1317_s26 = scalar_lea.sflag [#allocation4], %s365_s14 }
 0xcd8   : > { %v1242_v12 = vpop.permute.xlu0 %1241 }
 0xcd9   : > { %1583 = vmatmul.mubr.msk.f32.vlgmr.msra.gmra.mxu1 %vm651_vm3, %v1242_v12 }
 0xd99   : > { %v1311_v13 = vpop.f32.mrf.mxu1 }
 0xd9a   : > { %v1312_v14 = vadd.f32 %v1453_v0, %v1311_v13 }
 0xd9b   : > { %v1584_v15 = vpop.f32.mrf.mxu1 }
 0xd9c   : > { %1315 = vst [vmem:[%s367_s23] sm:$0xff] %v1312_v14 }
 0xd9d   : > { %1783 = shalt.err (!%p1780_p0)
}
 0xd9e   : > { %s1784_s27 = scalar_lea.hbm %s2123_s24, 128  ;;  %s1788_s23 = scalar_lea.hbm %s2167_s9, 256 }
 0xd9f   : > { %p1785_p6 = scmp.ne.s32.totalorder %s2123_s24, %s1784_s27  ;;  %p1789_p1 = scmp.lt.s32.totalorder %s2123_s24, %s2167_s9 }
 0xda0   : > { %p1790_p5 = scmp.lt.s32.totalorder %s1788_s23, %s1784_s27 }
 0xda1   : > { %p1786_p9 = pnand %p1785_p6, %p2178_p12 }
 0xda2   : > { %p1791_p3 = por %p1790_p5, %p1789_p1 }
 0xda3   : > { %p1787_p13 = pneg %p1786_p9 }
 0xda5   : > { %p1792_p10 = pnand %p1791_p3, %p1787_p13 }
 0xda7   : > { %1795 = shalt.err (!%p1792_p10)
}
 0xda8   : > { %1597 = dma.vmem_to_hbm [thread:$0]  (%p2178_p12), %s1331_s17, 128, %s2123_s24, %s1317_s26  }
 0xda9 PF: > { %p1619_p2 = scmp.ge.s32.totalorder %s1838_s12, 2  ;;  %s1342_s28 = sand.u32 1, %s1826_s30  }
 0xdaa   : > { %p2179_p4 = scmp.ne.s32.totalorder %s2171_s20, 0  ;;  %s1343_s25 = scalar_lea.sflag [#allocation4], %s1342_s28 }
 0xdac   : > { %p1610_p7 = pnand %p1619_p2, %p2179_p4 }
 0xdae   : > { %p1611_p8 = pneg %p1610_p7 }
 0xdb0   : > { %1821 = dma.done.wait (%p1611_p8), %s1343_s25, 128  }
 0xdb1   : > { %1823 = vsyncadd (%p1611_p8), %s1343_s25, 4294967168  ;;  %p21_p11 = scmp.ge.s32.totalorder %s1927_s15, 4   ;;  %s2180_s30 = smov %s1830_s10 }
 0xdb2   : > { %s2181_s10 = smov %s1834_s11  ;;  %s2182_s11 = smov %s1938_s18 }
 0xdb3   : > { %s2183_s12 = smov %s1927_s15  ;;  %23 = sbr.rel (!%p21_p11) target bundleno = 5 (0x5), region = 108 }
 0xdb8   :  { %1348 = vsyncpa [#allocation3], 1 }
 0xdb9   :  { %1350 = vsyncpa [#allocation3 + $0x1], 1 }
 0xdba   :  { %1351 = vsyncpa [#allocation6], 1 }
 0xdbb   :  { %1352 = vsyncpa [#allocation4], 1 }
 0xdbc   :  { %1354 = vsyncpa [#allocation4 + $0x1], 1 }

</bundles_post_ra>
